<compile_context>
chip_gen: v6e
topology: v6e:2x2x1
jax: 0.10.0
libtpu: 0.0.40
codegen_flags: <defaults>
</compile_context>

<pallas_src>
from functools import partial

import jax
import jax.numpy as jnp
import numpy as np
from jax import lax
from jax.experimental import pallas as pl
from jax.experimental.pallas import tpu as pltpu


# ----------------------------------------------------------------------------
# Kernel: fused (re-parameterised) RepConv row tile = 3x3 conv + bias + ReLU.
# ----------------------------------------------------------------------------
def repconv_kernel(x_ref, w_ref, b_ref, o_ref):
    # x_ref: (tR, Wpad, 3*Cin)  bf16  kh-unrolled, width-padded input rows
    # w_ref: (3, 3*Cin, Cout_p) bf16  one (K, N) weight slab per kw tap
    # b_ref: (1, Cout_p)        f32   merged bias
    # o_ref: (tR, Wo, Cout_p)   bf16  output rows (lane-dense Cout_p)
    tr, wpad, k = x_ref.shape
    wo = o_ref.shape[1]
    m = tr * wpad

    # Wpad % 8 == 0 -> merging the leading dims into the sublane dim is a
    # layout-preserving (free) view; no relayout copy.
    x2d = x_ref[...].reshape(m, k)

    acc = jnp.dot(x2d, w_ref[0], preferred_element_type=jnp.float32)
    for kw in (1, 2):                                     # static unroll
        r = jnp.dot(x2d, w_ref[kw], preferred_element_type=jnp.float32)
        # output col w needs padded col w + kw  ->  shift left by kw (XLU).
        # wrapped-around garbage lands only in columns >= Wo, cropped below.
        acc += pltpu.roll(r, shift=m - kw, axis=0)

    y = jnp.maximum(acc + b_ref[...], 0.0)
    # drop the width-padding garbage columns (>= Wo) at the store.
    o_ref[...] = y.reshape(tr, wpad, -1)[:, :wo, :].astype(o_ref.dtype)


# ----------------------------------------------------------------------------
# Host-side re-parameterisation (exact for eval-mode BatchNorm, stride = 1).
# Fold is done entirely in f32; only the final merged weight is cast to bf16.
# ----------------------------------------------------------------------------
def _fold_repconv(params, eps=1e-5):
    w3, b3 = params["w3"], params["b3"]          # (C, C, 3, 3), (C,)
    w1, b1 = params["w1"], params["b1"]          # (C, C, 1, 1), (C,)
    wdw, bdw = params["wdw"], params["bdw"]      # (C, 1, 3, 3), (C,)
    rz3, rz1, rzdw = params["rz3"], params["rz1"], params["rzdw"]

    def bn_affine(bn):
        gamma, beta, mean, var = bn
        s = gamma / jnp.sqrt(var + eps)
        return s, beta - mean * s

    s3, t3 = bn_affine(params["bn3"])
    s1, t1 = bn_affine(params["bn1"])
    sdw, tdw = bn_affine(params["bndw"])

    cout, cin = w3.shape[0], w3.shape[1]
    assert cin == cout, "identity/depthwise branches require Cin == Cout"

    # 3x3 branch (rz * BN scale folded into weights)
    w = w3 * (rz3 * s3)[:, None, None, None]
    # 1x1 branch -> centre tap of the 3x3 kernel
    w = w.at[:, :, 1, 1].add(w1[:, :, 0, 0] * (rz1 * s1)[:, None])
    # depthwise 3x3 branch -> diagonal of the dense 3x3 kernel
    idx = jnp.arange(cout)
    w = w.at[idx, idx, :, :].add(wdw[:, 0] * (rzdw * sdw)[:, None, None])
    # identity branch (stride 1) -> identity at the centre tap
    w = w.at[:, :, 1, 1].add(jnp.eye(cout, cin, dtype=w.dtype))

    bias = (rz3 * (s3 * b3 + t3) + rz1 * (s1 * b1 + t1)
            + rzdw * (sdw * bdw + tdw))
    return w, bias


# ----------------------------------------------------------------------------
# Row-tile picker: biggest divisor of Ho whose pipelined working set
# (double-buffered bf16 in/out blocks + f32 accumulator temps + weights)
# fits the VMEM budget.  Keeps >= 2 grid steps when B == 1 (v7x megacore).
# ----------------------------------------------------------------------------
def _pick_tile_rows(B, Ho, wpad, wo, cin3, cout_p, budget_bytes):
    best = 1
    for cand in range(1, Ho + 1):
        if Ho % cand:
            continue
        in_blk = cand * wpad * cin3 * 2          # bf16 input block
        out_blk = cand * wo * cout_p * 2         # bf16 output block
        acc_f32 = cand * wpad * cout_p * 4       # f32 matmul partials / acc
        w_b = 2 * (3 * cin3 * cout_p * 2 + cout_p * 4)
        need = 2 * (in_blk + out_blk) + 3 * acc_f32 + w_b + (64 << 10)
        if need > budget_bytes:
            continue
        if B == 1 and cand == Ho and Ho > 1:
            continue                              # keep >= 2 grid steps
        best = cand
    return best


# ----------------------------------------------------------------------------
# Wrapper: NCHW in / NCHW out (NHWC optionally), row-tiled pallas_call.
# ----------------------------------------------------------------------------
def repconv_pallas(x_nchw, params, *, tile_rows=None, vmem_budget_mb=24,
                   out_layout="NCHW"):
    B, Cin, H, W = x_nchw.shape
    Cout = params["w3"].shape[0]
    Ho, Wo = H, W                                  # stride 1, padding 1
    wpad = ((W + 2 + 7) // 8) * 8                  # sublane-aligned padded width
    cin3 = 3 * Cin                                 # kh folded into K
    cout_p = ((Cout + 127) // 128) * 128           # lane-dense N (unmasked vst)

    # ---- fold everything into one 3x3 conv (f32); cast merged weight to bf16 ----
    w_merged, bias = _fold_repconv(params)
    # (Cout, Cin, kh, kw) -> (kw, kh, Cin, Cout) -> (3, 3*Cin, Cout): K is kh-major
    w_taps = jnp.transpose(w_merged, (3, 2, 1, 0)).reshape(3, cin3, Cout)
    w_taps = jnp.pad(w_taps, ((0, 0), (0, 0), (0, cout_p - Cout))).astype(jnp.bfloat16)
    bias_p = jnp.pad(bias, (0, cout_p - Cout)).reshape(1, cout_p).astype(jnp.float32)

    # ---- one fused pre-pass: NCHW->NHWC, zero-pad, kh-unroll, bf16 cast ----
    x = jnp.transpose(x_nchw, (0, 2, 3, 1))                         # NHWC
    xp = jnp.pad(x, ((0, 0), (1, 1), (1, wpad - W - 1), (0, 0)))    # (B, H+2, wpad, Cin)
    xh = jnp.concatenate([xp[:, kh:kh + Ho] for kh in range(3)], axis=-1)
    xh = xh.reshape(B * Ho, wpad, cin3).astype(jnp.bfloat16)

    # ---- pick the row tile from a per-generation-safe VMEM budget ----
    if tile_rows is None:
        tile_rows = _pick_tile_rows(B, Ho, wpad, Wo, cin3, cout_p,
                                    vmem_budget_mb << 20)
    assert Ho % tile_rows == 0, "tile_rows must divide the output height"
    n_tiles = Ho // tile_rows

    out = pl.pallas_call(
        repconv_kernel,
        out_shape=jax.ShapeDtypeStruct((B * Ho, Wo, cout_p), jnp.bfloat16),
        grid_spec=pltpu.PrefetchScalarGridSpec(
            num_scalar_prefetch=0,
            grid=(B * n_tiles,),                   # non-overlapping row tiles
            in_specs=[
                pl.BlockSpec((tile_rows, wpad, cin3), lambda t: (t, 0, 0)),
                pl.BlockSpec((3, cin3, cout_p), lambda t: (0, 0, 0)),
                pl.BlockSpec((1, cout_p), lambda t: (0, 0)),
            ],
            out_specs=pl.BlockSpec((tile_rows, Wo, cout_p), lambda t: (t, 0, 0)),
        ),
        compiler_params=pltpu.CompilerParams(
            dimension_semantics=("parallel",),
            vmem_limit_bytes=48 * 1024 * 1024,     # fits v7x (64 MiB physical)
        ),
    )(xh, w_taps, bias_p)

    out = out[..., :Cout].reshape(B, Ho, Wo, Cout)
    if out_layout == "NHWC":
        return out.astype(x_nchw.dtype)
    return jnp.transpose(out, (0, 3, 1, 2)).astype(x_nchw.dtype)    # NCHW


# ----------------------------------------------------------------------------
# Pure-JAX NCHW reference matching the PyTorch module (eval-mode BN, stride=1).
# ----------------------------------------------------------------------------
def repconv_ref(x, params, eps=1e-5):
    def bn(y, p):
        gamma, beta, mean, var = p
        s = gamma / jnp.sqrt(var + eps)
        return y * s[None, :, None, None] + (beta - mean * s)[None, :, None, None]

    dn = ("NCHW", "OIHW", "NCHW")
    cin = x.shape[1]

    a = lax.conv_general_dilated(x, params["w3"], (1, 1), ((1, 1), (1, 1)),
                                 dimension_numbers=dn) + params["b3"][None, :, None, None]
    b = lax.conv_general_dilated(x, params["w1"], (1, 1), "VALID",
                                 dimension_numbers=dn) + params["b1"][None, :, None, None]
    d = lax.conv_general_dilated(x, params["wdw"], (1, 1), ((1, 1), (1, 1)),
                                 dimension_numbers=dn,
                                 feature_group_count=cin) + params["bdw"][None, :, None, None]

    y = x                                          # identity branch (stride 1)
    y = y + params["rz3"] * bn(a, params["bn3"])
    y = y + params["rz1"] * bn(b, params["bn1"])
    y = y + params["rzdw"] * bn(d, params["bndw"])
    return jnp.maximum(y, 0.0)


if __name__ == "__main__":
    B, C, H, W = 2, 8, 16, 16                      # Cin == Cout (depthconv)
    key = jax.random.PRNGKey(0)
    ks = jax.random.split(key, 16)

    def bn_params(k):
        k1, k2, k3, k4 = jax.random.split(k, 4)
        return (jax.random.uniform(k1, (C,), jnp.float32, 0.5, 1.5),   # gamma
                jax.random.normal(k2, (C,), jnp.float32) * 0.1,        # beta
                jax.random.normal(k3, (C,), jnp.float32) * 0.1,        # running_mean
                jax.random.uniform(k4, (C,), jnp.float32, 0.5, 1.5))   # running_var

    x = jax.random.normal(ks[0], (B, C, H, W), jnp.float32)
    params = {
        "w3":  jax.random.normal(ks[1], (C, C, 3, 3), jnp.float32) * 0.1,
        "b3":  jax.random.normal(ks[2], (C,), jnp.float32) * 0.1,
        "w1":  jax.random.normal(ks[3], (C, C, 1, 1), jnp.float32) * 0.1,
        "b1":  jax.random.normal(ks[4], (C,), jnp.float32) * 0.1,
        "wdw": jax.random.normal(ks[5], (C, 1, 3, 3), jnp.float32) * 0.1,
        "bdw": jax.random.normal(ks[6], (C,), jnp.float32) * 0.1,
        "bn3": bn_params(ks[7]),
        "bn1": bn_params(ks[8]),
        "bndw": bn_params(ks[9]),
        # random rz scales so every branch contributes to the check
        "rz3": 0.5 * jax.random.normal(ks[10], (), jnp.float32),
        "rz1": 0.5 * jax.random.normal(ks[11], (), jnp.float32),
        "rzdw": jnp.float32(1.0) + 0.3 * jax.random.normal(ks[12], (), jnp.float32),
    }

    # tile_rows=8 -> 2 row tiles per image (exercises the tiled / rolled path)
    run = jax.jit(partial(repconv_pallas, tile_rows=8))
    out = jax.block_until_ready(run(x, params))
    ref = jax.block_until_ready(repconv_ref(x, params))
    # bf16 matmul inputs + bf16 output store (f32 accumulate) -> ~1e-2 tolerance
    np.testing.assert_allclose(np.asarray(out, np.float32), np.asarray(ref),
                               rtol=5e-2, atol=5e-2)
    print("KERNEL_OK")
</pallas_src>

<mosaic_0001>
module attributes {stable_mosaic.version = 11 : i64} {
  func.func @repconv_kernel(%arg0: i32, %arg1: memref<8x24x24xbf16, #tpu.memory_space<vmem>>, %arg2: memref<3x24x128xbf16, #tpu.memory_space<vmem>>, %arg3: memref<1x128xf32, #tpu.memory_space<vmem>>, %arg4: memref<8x16x128xbf16, #tpu.memory_space<vmem>>) attributes {dimension_semantics = [#tpu.dimension_semantics<parallel>], iteration_bounds = array<i64: 4>, scalar_prefetch = 0 : i64, scratch_operands = 0 : i64, tpu.core_type = #tpu.core_type<tc>, window_params = [{transform_indices = @transform_0, window_bounds = array<i64: 8, 24, 24>}, {pipeline_mode = #tpu.pipeline_mode<synchronous>, transform_indices = @transform_1, window_bounds = array<i64: 3, 24, 128>}, {pipeline_mode = #tpu.pipeline_mode<synchronous>, transform_indices = @transform_2, window_bounds = array<i64: 1, 128>}, {transform_indices = @transform_3, window_bounds = array<i64: 8, 16, 128>}]} {
    %c0 = arith.constant 0 : index
    %c0_0 = arith.constant 0 : index
    %c0_1 = arith.constant 0 : index
    %0 = vector.load %arg1[%c0, %c0_0, %c0_1] : memref<8x24x24xbf16, #tpu.memory_space<vmem>>, vector<8x24x24xbf16>
    %1 = vector.shape_cast %0 : vector<8x24x24xbf16> to vector<192x24xbf16>
    %c0_2 = arith.constant 0 : index
    %c0_3 = arith.constant 0 : index
    %c0_4 = arith.constant 0 : index
    %2 = vector.load %arg2[%c0_2, %c0_3, %c0_4] : memref<3x24x128xbf16, #tpu.memory_space<vmem>>, vector<1x24x128xbf16>
    %3 = vector.shape_cast %2 : vector<1x24x128xbf16> to vector<24x128xbf16>
    %cst = arith.constant dense<0.000000e+00> : vector<192x128xf32>
    %4 = tpu.matmul %1, %3, %cst {dimension_numbers = #tpu.dot_dimension_numbers<[1], [0], [0], [1], [0, 0, 1, 1], [], []>} : vector<192x24xbf16>, vector<24x128xbf16>, vector<192x128xf32> -> vector<192x128xf32>
    %c1 = arith.constant 1 : index
    %c0_5 = arith.constant 0 : index
    %c0_6 = arith.constant 0 : index
    %5 = vector.load %arg2[%c1, %c0_5, %c0_6] : memref<3x24x128xbf16, #tpu.memory_space<vmem>>, vector<1x24x128xbf16>
    %6 = vector.shape_cast %5 : vector<1x24x128xbf16> to vector<24x128xbf16>
    %cst_7 = arith.constant dense<0.000000e+00> : vector<192x128xf32>
    %7 = tpu.matmul %1, %6, %cst_7 {dimension_numbers = #tpu.dot_dimension_numbers<[1], [0], [0], [1], [0, 0, 1, 1], [], []>} : vector<192x24xbf16>, vector<24x128xbf16>, vector<192x128xf32> -> vector<192x128xf32>
    %c191_i32 = arith.constant 191 : i32
    %8 = tpu.dynamic_rotate %7 by %c191_i32 dim 0 : vector<192x128xf32>, i32 -> vector<192x128xf32>
    %9 = arith.addf %4, %8 : vector<192x128xf32>
    %c2 = arith.constant 2 : index
    %c0_8 = arith.constant 0 : index
    %c0_9 = arith.constant 0 : index
    %10 = vector.load %arg2[%c2, %c0_8, %c0_9] : memref<3x24x128xbf16, #tpu.memory_space<vmem>>, vector<1x24x128xbf16>
    %11 = vector.shape_cast %10 : vector<1x24x128xbf16> to vector<24x128xbf16>
    %cst_10 = arith.constant dense<0.000000e+00> : vector<192x128xf32>
    %12 = tpu.matmul %1, %11, %cst_10 {dimension_numbers = #tpu.dot_dimension_numbers<[1], [0], [0], [1], [0, 0, 1, 1], [], []>} : vector<192x24xbf16>, vector<24x128xbf16>, vector<192x128xf32> -> vector<192x128xf32>
    %c190_i32 = arith.constant 190 : i32
    %13 = tpu.dynamic_rotate %12 by %c190_i32 dim 0 : vector<192x128xf32>, i32 -> vector<192x128xf32>
    %14 = arith.addf %9, %13 : vector<192x128xf32>
    %c0_11 = arith.constant 0 : index
    %c0_12 = arith.constant 0 : index
    %15 = vector.load %arg3[%c0_11, %c0_12] : memref<1x128xf32, #tpu.memory_space<vmem>>, vector<1x128xf32>
    %16 = vector.broadcast %15 : vector<1x128xf32> to vector<192x128xf32>
    %17 = arith.addf %14, %16 : vector<192x128xf32>
    %cst_13 = arith.constant 0.000000e+00 : f32
    %18 = vector.broadcast %cst_13 : f32 to vector<192x128xf32>
    %19 = arith.maximumf %17, %18 : vector<192x128xf32>
    %20 = vector.shape_cast %19 : vector<192x128xf32> to vector<8x24x128xf32>
    %21 = vector.extract_strided_slice %20 {offsets = [0, 0, 0], sizes = [8, 16, 128], strides = [1, 1, 1]} : vector<8x24x128xf32> to vector<8x16x128xf32>
    %22 = arith.truncf %21 : vector<8x16x128xf32> to vector<8x16x128xbf16>
    %c0_14 = arith.constant 0 : index
    %c0_15 = arith.constant 0 : index
    %c0_16 = arith.constant 0 : index
    %23 = vector.load %arg4[%c0_14, %c0_15, %c0_16] : memref<8x16x128xbf16, #tpu.memory_space<vmem>>, vector<8x16x128xbf16>
    tpu.vector_store %arg4[%c0_14, %c0_15, %c0_16], %22 {strides = array<i32>} : memref<8x16x128xbf16, #tpu.memory_space<vmem>>, vector<8x16x128xbf16>,
    return
  }
  func.func @transform_0(%arg0: i32) -> (i32, i32, i32) {
    %c0_i32 = arith.constant 0 : i32
    %c0_i32_0 = arith.constant 0 : i32
    %c0_i32_1 = arith.constant 0 : i32
    return %arg0, %c0_i32, %c0_i32_0 : i32, i32, i32
  }
  func.func @transform_1(%arg0: i32) -> (i32, i32, i32) {
    %c0_i32 = arith.constant 0 : i32
    %c0_i32_0 = arith.constant 0 : i32
    %c0_i32_1 = arith.constant 0 : i32
    %c0_i32_2 = arith.constant 0 : i32
    return %c0_i32, %c0_i32_0, %c0_i32_1 : i32, i32, i32
  }
  func.func @transform_2(%arg0: i32) -> (i32, i32) {
    %c0_i32 = arith.constant 0 : i32
    %c0_i32_0 = arith.constant 0 : i32
    %c0_i32_1 = arith.constant 0 : i32
    return %c0_i32, %c0_i32_0 : i32, i32
  }
  func.func @transform_3(%arg0: i32) -> (i32, i32, i32) {
    %c0_i32 = arith.constant 0 : i32
    %c0_i32_0 = arith.constant 0 : i32
    %c0_i32_1 = arith.constant 0 : i32
    return %arg0, %c0_i32, %c0_i32_0 : i32, i32, i32
  }
}

</mosaic_0001>

<bundles_post_ra>
// kernel: repconv_pallas.1
= control target key start
LH: loop header
LB: loop body
LE: loop exit
PB: predicated region body
PF: predicated region fallthrough
CT: control target
= control target key end

     0   :  { %s1347_s12 = smov 0   ;;  %s1602_s0 = inlined_call_operand.vmem [shape: bf16[32,24,24], index: 0, kind: input, shape index: {}]   ;;  %s1603_s1 = inlined_call_operand.vmem [shape: bf16[3,24,128], index: 1, kind: input, shape index: {}]   ;;  %s1604_s2 = inlined_call_operand.vmem [shape: f32[1,128], index: 2, kind: input, shape index: {}]   ;;  %s1605_s3 = inlined_call_operand.vmem [shape: bf16[32,16,128], index: 3, kind: output, shape index: {}]  }
   0x1 LB: > { %s1005_s13 = sadd.s32 4294967295, %s1325_s12   ;;  %p1009_p0 = scmp.ge.s32.totalorder %s1325_s12, 1  ;;  %s1325_s12 = sphi %s1347_s12, %s13_s12  }
   0x2   : > { %p139_p1 = scmp.lt.s32.totalorder %s1325_s12, 5 }
   0x4   : > { %p140_p2 = pnand %p1009_p0, %p139_p1 }
   0x5   : > { %s1010_s18 = sshll.u32 (!%p140_p2), %s1005_s13, 3 }
   0x6   : > { %143 = sbr.rel (%p140_p2) target bundleno = 295 (0x127), region = 32  ;;  %p166_p3 = scmp.lt.s32.totalorder (!%p140_p2), %s1010_s18, 31 }
   0xb   : > { %v1301_v0 = vld [vmem:[%s1603_s1 + $0x14] ss:$0 sps:$4 sm:$0xff]   ;;  %vm317_vm0 = vcmask 1043456   ;;  %v1302_v1 = vld [vmem:[%s1603_s1 + $0xc] sm:$0xff]   ;;  %v1305_v3 = vld [vmem:[%s1603_s1 + $0x20] ss:$0 sps:$4 sm:$0xff]   ;;  %v474_v41 = vlaneseq }
   0xc   : > { %1288 = vmatprep.subr.msk.bf16.mxu0 %vm317_vm0, %v1301_v0  ;;  %1289 = vmatprep.subr.msk.bf16.mxu1 %vm317_vm0, %v1301_v0  ;;  %v319_v2 = vsel %vm317_vm0, %v1301_v0, 0  ;;  %s1607_s18 = smov (!%p166_p3, %s1010_s18), 31  ;;  %v1308_v4 = vld [vmem:[%s1603_s1 + $0x8] ss:$0 sps:$4 sm:$0xff]   ;;  %vm280_vm1 = vcmask 195584   ;;  %v1313_v7 = vld [vmem:[%s1603_s1 + $0x18] sm:$0xff]  }
   0xd   : > { %1201 = vmatpush3.bf16.msra.mxu0 %v319_v2  ;;  %1286 = vmatpush3.bf16.msra.mxu1 %v319_v2  ;;  %s1292_s23 = smul.u32 12, %s1607_s18  ;;  %v640_v9 = vsel %vm317_vm0, %v1305_v3, 0  ;;  %v1314_v10 = vld [vmem:[%s1603_s1] sm:$0xff]   ;;  %v503_v12 = vsel %vm317_vm0, %v1308_v4, 0  ;;  %v1476_v46 = vshrl.u32 %v474_v41, 7  ;;  %s1094_s6 = sshll.u32 %s1607_s18, 3 }
   0xe   : > { %1202 = vmatprep.subr.bf16.mxu0 %v1302_v1  ;;  %1285 = vmatprep.subr.bf16.mxu1 %v1302_v1  ;;  %s1510_s9 = scalar_lea.vmem %s1605_s3, %s1094_s6 }
   0xf   : > { %s1376_s26 = scalar_lea.vmem %s1602_s0, %s1292_s23  ;;  %vm476_vm2 = vcmp.lt.s32.totalorder %v1476_v46, 7  ;;  %vm795_vm3 = vcmp.lt.s32.totalorder %v1476_v46, 6 }
  0x10   : > { %v1303_v5 = vld [vmem:[%s1376_s26] sm:$0xff]   ;;  %v1304_v6 = vld [vmem:[%s1376_s26 + $0x30] sm:$0xff]   ;;  %v1306_v8 = vld [vmem:[%s1376_s26 + $0x8] sm:$0xff]  }
  0x11   : > { %1203 = vmatpush3.bf16.msra.mxu0 %v1302_v1  ;;  %1287 = vmatpush3.bf16.msra.mxu1 %v1302_v1  ;;  %v1307_v11 = vld [vmem:[%s1376_s26 + $0x38] sm:$0xff]   ;;  %v1309_v13 = vld [vmem:[%s1376_s26 + $0x10] sm:$0xff]   ;;  %v1310_v14 = vld [vmem:[%s1376_s26 + $0x40] sm:$0xff]  }
  0x12   : > { %1291 = vmatprep.subr.msk.bf16.mxu0 %vm317_vm0, %v1305_v3  ;;  %1290 = vmatprep.subr.msk.bf16.mxu1 %vm317_vm0, %v1308_v4  ;;  %v1311_v15 = vld [vmem:[%s1376_s26 + $0x18] sm:$0xff]   ;;  %v1312_v16 = vld [vmem:[%s1376_s26 + $0x48] sm:$0xff]   ;;  %v1315_v17 = vld [vmem:[%s1376_s26 + $0x20] sm:$0xff]  }
  0x13   : > { %1204 = vmatprep.mubr.msk.bf16.mxu0 %vm280_vm1, %v1303_v5  ;;  %1216 = vmatprep.mubr.msk.bf16.mxu1 %vm280_vm1, %v1304_v6  ;;  %v1316_v18 = vld [vmem:[%s1376_s26 + $0x50] sm:$0xff]   ;;  %v1317_v19 = vld [vmem:[%s1376_s26 + $0x28] sm:$0xff]   ;;  %v1318_v20 = vld [vmem:[%s1376_s26 + $0x58] sm:$0xff]  }
  0x14   : > { %1205 = vmatmul.mubr.msk.bf16.vlgmr.msra.gmra.mxu0 %vm280_vm1, %v1306_v8  ;;  %1217 = vmatmul.mubr.msk.bf16.vlgmr.msra.gmra.mxu1 %vm280_vm1, %v1307_v11 }
  0x15   : > { %1257 = vmatpush3.bf16.msra.mxu0 %v640_v9  ;;  %1229 = vmatpush3.bf16.msra.mxu1 %v503_v12 }
  0x16   : > { %1208 = vmatprep.mubr.msk.bf16.mxu0 %vm280_vm1, %v1309_v13  ;;  %1220 = vmatprep.mubr.msk.bf16.mxu1 %vm280_vm1, %v1310_v14 }
  0x17   : > { %1258 = vmatprep.subr.bf16.mxu0 %v1313_v7  ;;  %1230 = vmatprep.subr.bf16.mxu1 %v1314_v10 }
  0x19   : > { %1259 = vmatpush3.bf16.msra.mxu0 %v1313_v7  ;;  %1231 = vmatpush3.bf16.msra.mxu1 %v1314_v10 }
  0x1c   : > { %1209 = vmatmul.mubr.msk.bf16.gmra.mxu0 %vm280_vm1, %v1311_v15  ;;  %1221 = vmatmul.mubr.msk.bf16.gmra.mxu1 %vm280_vm1, %v1312_v16 }
  0x1d   : > { %1212 = vmatprep.mubr.msk.bf16.mxu0 %vm280_vm1, %v1315_v17  ;;  %1224 = vmatprep.mubr.msk.bf16.mxu1 %vm280_vm1, %v1316_v18 }
  0x24   : > { %1213 = vmatmul.mubr.msk.bf16.gmra.mxu0 %vm280_vm1, %v1317_v19  ;;  %1225 = vmatmul.mubr.msk.bf16.gmra.mxu1 %vm280_vm1, %v1318_v20 }
  0x25   : > { %1260 = vmatprep.mubr.msk.bf16.mxu0 %vm280_vm1, %v1303_v5  ;;  %1232 = vmatprep.mubr.msk.bf16.mxu1 %vm280_vm1, %v1303_v5 }
  0x2c   : > { %1261 = vmatmul.mubr.msk.bf16.vlgmr.msra.gmra.mxu0 %vm280_vm1, %v1306_v8  ;;  %1233 = vmatmul.mubr.msk.bf16.vlgmr.msra.gmra.mxu1 %vm280_vm1, %v1306_v8 }
  0x2d   : > { %1264 = vmatprep.mubr.msk.bf16.mxu0 %vm280_vm1, %v1309_v13  ;;  %1236 = vmatprep.mubr.msk.bf16.mxu1 %vm280_vm1, %v1309_v13 }
  0x34   : > { %1265 = vmatmul.mubr.msk.bf16.gmra.mxu0 %vm280_vm1, %v1311_v15  ;;  %1237 = vmatmul.mubr.msk.bf16.gmra.mxu1 %vm280_vm1, %v1311_v15 }
  0x35   : > { %1268 = vmatprep.mubr.msk.bf16.mxu0 %vm280_vm1, %v1315_v17  ;;  %1240 = vmatprep.mubr.msk.bf16.mxu1 %vm280_vm1, %v1315_v17 }
  0x3c   : > { %1269 = vmatmul.mubr.msk.bf16.gmra.mxu0 %vm280_vm1, %v1317_v19  ;;  %1241 = vmatmul.mubr.msk.bf16.gmra.mxu1 %vm280_vm1, %v1317_v19 }
  0x3d   : > { %1272 = vmatprep.mubr.msk.bf16.mxu0 %vm280_vm1, %v1304_v6  ;;  %1244 = vmatprep.mubr.msk.bf16.mxu1 %vm280_vm1, %v1304_v6  ;;  %v1492_v6 = vld [vmem:[%s1604_s2] ss:$0 sm:$0xff] }
  0x44   : > { %1273 = vmatmul.mubr.msk.bf16.gmra.mxu0 %vm280_vm1, %v1307_v11  ;;  %1245 = vmatmul.mubr.msk.bf16.gmra.mxu1 %vm280_vm1, %v1307_v11 }
  0x45   : > { %1276 = vmatprep.mubr.msk.bf16.mxu0 %vm280_vm1, %v1310_v14  ;;  %1248 = vmatprep.mubr.msk.bf16.mxu1 %vm280_vm1, %v1310_v14 }
  0x4c   : > { %1277 = vmatmul.mubr.msk.bf16.gmra.mxu0 %vm280_vm1, %v1312_v16  ;;  %1249 = vmatmul.mubr.msk.bf16.gmra.mxu1 %vm280_vm1, %v1312_v16 }
  0x4d   : > { %1280 = vmatprep.mubr.msk.bf16.mxu0 %vm280_vm1, %v1316_v18  ;;  %1252 = vmatprep.mubr.msk.bf16.mxu1 %vm280_vm1, %v1316_v18 }
  0x54   : > { %1281 = vmatmul.mubr.msk.bf16.gmra.mxu0 %vm280_vm1, %v1318_v20  ;;  %1253 = vmatmul.mubr.msk.bf16.gmra.mxu1 %vm280_vm1, %v1318_v20 }
  0xd4   : > { %v1206_v21 = vpop.f32.mrf.mxu0  ;;  %v1436_v22 = vpop.f32.mrf.mxu1 }
  0xd5   : > { %v452_v52 = vrot.slane %v1206_v21, 1 }
  0xd6   : > { %v355_v23 = vpop.f32.mrf.mxu0  ;;  %v1438_v24 = vpop.f32.mrf.mxu1 }
  0xd7   : > { %v450_v53 = vrot.slane %v355_v23, 1 }
  0xd8   : > { %v1207_v25 = vpop.f32.mrf.mxu0  ;;  %v1440_v26 = vpop.f32.mrf.mxu1 }
  0xd9   : > { %v453_v3 = vrot.slane %v1207_v25, 1 }
  0xda   : > { %v358_v27 = vpop.f32.mrf.mxu0  ;;  %v1442_v28 = vpop.f32.mrf.mxu1 }
  0xdb   : > { %v451_v49 = vrot.slane %v358_v27, 1 }
  0xdc   : > { %v1444_v29 = vpop.f32.mrf.mxu0  ;;  %v1446_v30 = vpop.f32.mrf.mxu1 }
  0xdd   : > { %v492_v56 = vsel %vm476_vm2, %v450_v53, %v451_v49  ;;  %v491_v57 = vsel %vm476_vm2, %v451_v49, %v452_v52  ;;  %v456_v17 = vrot.slane %v1444_v29, 1 }
  0xde   : > { %v1448_v31 = vpop.f32.mrf.mxu0  ;;  %v1450_v32 = vpop.f32.mrf.mxu1 }
  0xdf   : > { %v454_v59 = vrot.slane %v1448_v31, 1 }
  0xe0   : > { %v1452_v33 = vpop.f32.mrf.mxu0  ;;  %v1454_v34 = vpop.f32.mrf.mxu1 }
  0xe1   : > { %v457_v8 = vrot.slane %v1452_v33, 1  ;;  %v490_v13 = vsel %vm476_vm2, %v453_v3, %v454_v59 }
  0xe2   : > { %v1456_v35 = vpop.f32.mrf.mxu0  ;;  %v1458_v36 = vpop.f32.mrf.mxu1 }
  0xe3   : > { %v455_v12 = vrot.slane %v1456_v35, 1  ;;  %v488_v41 = vsel %vm476_vm2, %v456_v17, %v457_v8 }
  0xe4   : > { %v1460_v37 = vpop.f32.mrf.mxu0  ;;  %v1462_v38 = vpop.f32.mrf.mxu1 }
  0xe5   : > { %v489_v49 = vsel %vm476_vm2, %v454_v59, %v455_v12 }
  0xe6   : > { %v1464_v39 = vpop.f32.mrf.mxu0  ;;  %v1466_v40 = vpop.f32.mrf.mxu1 }
  0xe8   : > { %v1468_v42 = vpop.f32.mrf.mxu0  ;;  %v1470_v43 = vpop.f32.mrf.mxu1 }
  0xe9   : > { %v461_v53 = vrot.slane %v1468_v42, 1 }
  0xea   : > { %v1472_v44 = vpop.f32.mrf.mxu0  ;;  %v1474_v45 = vpop.f32.mrf.mxu1 }
  0xec   : > { %v1262_v47 = vpop.f32.mrf.mxu0  ;;  %v1234_v48 = vpop.f32.mrf.mxu1 }
  0xed   : > { %v773_v60 = vrot.slane %v1262_v47, 2  ;;  %v458_v48 = vrot.slane %v1464_v39, 1 }
  0xee   : > { %v676_v50 = vpop.f32.mrf.mxu0  ;;  %v539_v51 = vpop.f32.mrf.mxu1 }
  0xef   : > { %v771_v61 = vrot.slane %v676_v50, 2  ;;  %v540_v0 = vadd.f32 %v539_v51, %v492_v56  ;;  %v487_v42 = vsel %vm476_vm2, %v457_v8, %v458_v48 }
  0xf0   : > { %v1263_v54 = vpop.f32.mrf.mxu0  ;;  %v1235_v55 = vpop.f32.mrf.mxu1 }
  0xf1   : > { %v774_v14 = vrot.slane %v1263_v54, 2  ;;  %v550_v18 = vadd.f32 %v1235_v55, %v490_v13 }
  0xf2   : > { %v679_v58 = vpop.f32.mrf.mxu0  ;;  %v542_v62 = vpop.f32.mrf.mxu1 }
  0xf3   : > { %v772_v63 = vrot.slane %v679_v58, 2  ;;  %v543_v1 = vadd.f32 %v542_v62, %v491_v57 }
  0xf4   : > { %v1266_v2 = vpop.f32.mrf.mxu0  ;;  %v1238_v7 = vpop.f32.mrf.mxu1 }
  0xf5   : > { %v810_v4 = vsel %vm795_vm3, %v772_v63, %v773_v60  ;;  %v811_v5 = vsel %vm795_vm3, %v771_v61, %v772_v63  ;;  %v777_v23 = vrot.slane %v1266_v2, 2  ;;  %v562_v55 = vadd.f32 %v1238_v7, %v488_v41 }
  0xf6   : > { %v812_v9 = vadd.f32 %v811_v5, %v540_v0  ;;  %v813_v10 = vadd.f32 %v810_v4, %v543_v1  ;;  %v692_v11 = vpop.f32.mrf.mxu0  ;;  %v554_v15 = vpop.f32.mrf.mxu1  ;;  %v460_v61 = vrot.slane %v1460_v37, 1  ;;  %v459_v0 = vrot.slane %v1472_v44, 1 }
  0xf7   : > { %v775_v16 = vrot.slane %v692_v11, 2  ;;  %v555_v56 = vadd.f32 %v554_v15, %v489_v49 }
  0xf8   : > { %v835_v19 = vadd.f32 %v1492_v6, %v812_v9  ;;  %v836_v20 = vadd.f32 %v1492_v6, %v813_v10  ;;  %v1267_v21 = vpop.f32.mrf.mxu0  ;;  %v1239_v27 = vpop.f32.mrf.mxu1  ;;  %v485_v5 = vsel %vm476_vm2, %v460_v61, %v461_v53  ;;  %v486_v17 = vsel %vm476_vm2, %v459_v0, %v460_v61 }
  0xf9   : > { %v809_v25 = vsel %vm795_vm3, %v774_v14, %v775_v16  ;;  %v778_v31 = vrot.slane %v1267_v21, 2  ;;  %v565_v3 = vadd.f32 %v1239_v27, %v487_v42 }
  0xfa   : > { %v851_v33 = vmax.f32 %v835_v19, 0.0  ;;  %v852_v35 = vmax.f32 %v836_v20, 0.0  ;;  %v814_v47 = vadd.f32 %v809_v25, %v550_v18  ;;  %v695_v29 = vpop.f32.mrf.mxu0  ;;  %v557_v51 = vpop.f32.mrf.mxu1 }
  0xfb   : > { %v807_v50 = vsel %vm795_vm3, %v777_v23, %v778_v31  ;;  %v776_v52 = vrot.slane %v695_v29, 2  ;;  %v464_v51 = vrot.slane %v1436_v22, 1  ;;  %v466_v22 = vrot.slane %v1450_v32, 1 }
  0xfc   : > { %v1114_v54 = vpack.c.bf16 %v852_v35, %v851_v33  ;;  %v1270_v39 = vpop.f32.mrf.mxu0  ;;  %v837_v57 = vadd.f32 %v1492_v6, %v814_v47  ;;  %v1242_v60 = vpop.f32.mrf.mxu1  ;;  %v816_v59 = vadd.f32 %v807_v50, %v562_v55 }
  0xfd   : > { %v808_v58 = vsel %vm795_vm3, %v775_v16, %v776_v52  ;;  %v781_v37 = vrot.slane %v1270_v39, 2  ;;  %v577_v8 = vadd.f32 %v1242_v60, %v485_v5  ;;  %v462_v52 = vrot.slane %v1438_v24, 1 }
  0xfe   : > { %1115 = vst [vmem:[%s1510_s9] sm:$0xff] %v1114_v54   ;;  %v815_v62 = vadd.f32 %v808_v58, %v555_v56  ;;  %v708_v63 = vpop.f32.mrf.mxu0  ;;  %v569_v1 = vpop.f32.mrf.mxu1  ;;  %v853_v9 = vmax.f32 %v837_v57, 0.0  ;;  %v839_v44 = vadd.f32 %v1492_v6, %v816_v59 }
  0xff   : > { %v779_v2 = vrot.slane %v708_v63, 2 }
 0x100   : > { %v838_v4 = vadd.f32 %v1492_v6, %v815_v62  ;;  %v1271_v7 = vpop.f32.mrf.mxu0  ;;  %v1243_v11 = vpop.f32.mrf.mxu1  ;;  %v855_v41 = vmax.f32 %v839_v44, 0.0 }
 0x101   : > { %v806_v10 = vsel %vm795_vm3, %v778_v31, %v779_v2  ;;  %v782_v12 = vrot.slane %v1271_v7, 2  ;;  %v463_v31 = vrot.slane %v1442_v28, 1  ;;  %v465_v2 = vrot.slane %v1440_v26, 1 }
 0x102   : > { %v854_v13 = vmax.f32 %v838_v4, 0.0  ;;  %v817_v14 = vadd.f32 %v806_v10, %v565_v3  ;;  %v711_v15 = vpop.f32.mrf.mxu0  ;;  %v571_v18 = vpop.f32.mrf.mxu1  ;;  %v469_v7 = vrot.slane %v1454_v34, 1  ;;  %v467_v10 = vrot.slane %v1458_v36, 1 }
 0x103   : > { %v804_v16 = vsel %vm795_vm3, %v781_v37, %v782_v12  ;;  %v780_v19 = vrot.slane %v711_v15, 2  ;;  %v572_v25 = vadd.f32 %v571_v18, %v486_v17  ;;  %v484_v57 = vsel %vm476_vm2, %v462_v52, %v463_v31 }
 0x104   : > { %v1119_v20 = vpack.c.bf16 %v854_v13, %v853_v9  ;;  %v840_v21 = vadd.f32 %v1492_v6, %v817_v14  ;;  %v819_v23 = vadd.f32 %v804_v16, %v577_v8  ;;  %v1274_v27 = vpop.f32.mrf.mxu0  ;;  %v1246_v35 = vpop.f32.mrf.mxu1  ;;  %v483_v58 = vsel %vm476_vm2, %v463_v31, %v464_v51 }
 0x105   : > { %v805_v33 = vsel %vm795_vm3, %v780_v19, %v781_v37  ;;  %v785_v61 = vrot.slane %v1274_v27, 2  ;;  %v482_v11 = vsel %vm476_vm2, %v465_v2, %v466_v22  ;;  %v468_v13 = vrot.slane %v1446_v30, 1 }
 0x106   : > { %1151 = vst [vmem:[%s1510_s9 + $0x8] sm:$0xff] %v1119_v20   ;;  %v856_v47 = vmax.f32 %v840_v21, 0.0  ;;  %v842_v29 = vadd.f32 %v1492_v6, %v819_v23  ;;  %v818_v48 = vadd.f32 %v805_v33, %v572_v25  ;;  %v724_v49 = vpop.f32.mrf.mxu0  ;;  %v583_v50 = vpop.f32.mrf.mxu1  ;;  %v470_v25 = vrot.slane %v1466_v40, 1 }
 0x107   : > { %v783_v24 = vrot.slane %v724_v49, 2  ;;  %v584_v0 = vadd.f32 %v583_v50, %v484_v57  ;;  %v480_v21 = vsel %vm476_vm2, %v468_v13, %v469_v7  ;;  %v481_v27 = vsel %vm476_vm2, %v466_v22, %v467_v10 }
 0x108   : > { %v1124_v53 = vpack.c.bf16 %v856_v47, %v855_v41  ;;  %v841_v28 = vadd.f32 %v1492_v6, %v818_v48  ;;  %v1275_v54 = vpop.f32.mrf.mxu0  ;;  %v1247_v55 = vpop.f32.mrf.mxu1  ;;  %v858_v56 = vmax.f32 %v842_v29, 0.0  ;;  %v473_v41 = vrot.slane %v1470_v43, 1 }
 0x109   : > { %v786_v12 = vrot.slane %v1275_v54, 2  ;;  %v594_v8 = vadd.f32 %v1247_v55, %v482_v11  ;;  %v472_v52 = vrot.slane %v1462_v38, 1  ;;  %v471_v55 = vrot.slane %v1474_v45, 1 }
 0x10a   : > { %1152 = vst [vmem:[%s1510_s9 + $0x10] sm:$0xff] %v1124_v53   ;;  %v857_v39 = vmax.f32 %v841_v28, 0.0  ;;  %v727_v60 = vpop.f32.mrf.mxu0  ;;  %v586_v59 = vpop.f32.mrf.mxu1  ;;  %v479_v43 = vsel %vm476_vm2, %v469_v7, %v470_v25 }
 0x10b   : > { %v784_v62 = vrot.slane %v727_v60, 2  ;;  %v587_v42 = vadd.f32 %v586_v59, %v483_v58  ;;  %v477_v60 = vsel %vm476_vm2, %v472_v52, %v473_v41 }
 0x10c   : > { %v1129_v63 = vpack.c.bf16 %v858_v56, %v857_v39  ;;  %v1278_v1 = vpop.f32.mrf.mxu0  ;;  %v1250_v5 = vpop.f32.mrf.mxu1 }
 0x10d   : > { %v802_v3 = vsel %vm795_vm3, %v784_v62, %v785_v61  ;;  %v803_v4 = vsel %vm795_vm3, %v783_v24, %v784_v62  ;;  %v789_v16 = vrot.slane %v1278_v1, 2  ;;  %v606_v29 = vadd.f32 %v1250_v5, %v480_v21 }
 0x10e   : > { %1153 = vst [vmem:[%s1510_s9 + $0x18] sm:$0xff] %v1129_v63   ;;  %v820_v32 = vadd.f32 %v803_v4, %v584_v0  ;;  %v821_v9 = vadd.f32 %v802_v3, %v587_v42  ;;  %v740_v37 = vpop.f32.mrf.mxu0  ;;  %v598_v26 = vpop.f32.mrf.mxu1  ;;  %v478_v3 = vsel %vm476_vm2, %v471_v55, %v472_v52 }
 0x10f   : > { %v787_v44 = vrot.slane %v740_v37, 2  ;;  %v599_v48 = vadd.f32 %v598_v26, %v481_v27 }
 0x110   : > { %v843_v14 = vadd.f32 %v1492_v6, %v820_v32  ;;  %v844_v15 = vadd.f32 %v1492_v6, %v821_v9  ;;  %v1279_v34 = vpop.f32.mrf.mxu0  ;;  %v1251_v18 = vpop.f32.mrf.mxu1 }
 0x111   : > { %v801_v17 = vsel %vm795_vm3, %v786_v12, %v787_v44  ;;  %v790_v36 = vrot.slane %v1279_v34, 2  ;;  %v609_v57 = vadd.f32 %v1251_v18, %v479_v43 }
 0x112   : > { %v859_v19 = vmax.f32 %v843_v14, 0.0  ;;  %v860_v20 = vmax.f32 %v844_v15, 0.0  ;;  %v822_v23 = vadd.f32 %v801_v17, %v594_v8  ;;  %v743_v30 = vpop.f32.mrf.mxu0  ;;  %v601_v33 = vpop.f32.mrf.mxu1 }
 0x113   : > { %v799_v31 = vsel %vm795_vm3, %v789_v16, %v790_v36  ;;  %v788_v35 = vrot.slane %v743_v30, 2 }
 0x114   : > { %v1134_v47 = vpack.c.bf16 %v860_v20, %v859_v19  ;;  %v1282_v49 = vpop.f32.mrf.mxu0  ;;  %v845_v50 = vadd.f32 %v1492_v6, %v822_v23  ;;  %v1254_v40 = vpop.f32.mrf.mxu1  ;;  %v824_v53 = vadd.f32 %v799_v31, %v606_v29 }
 0x115   : > { %v800_v51 = vsel %vm795_vm3, %v787_v44, %v788_v35  ;;  %v793_v38 = vrot.slane %v1282_v49, 2  ;;  %v621_v0 = vadd.f32 %v1254_v40, %v477_v60 }
 0x116   : > { %1154 = vst [vmem:[%s1510_s9 + $0x20] sm:$0xff] %v1134_v47   ;;  %v823_v28 = vadd.f32 %v800_v51, %v599_v48  ;;  %v756_v54 = vpop.f32.mrf.mxu0  ;;  %v613_v56 = vpop.f32.mrf.mxu1  ;;  %v861_v61 = vmax.f32 %v845_v50, 0.0  ;;  %v847_v45 = vadd.f32 %v1492_v6, %v824_v53 }
 0x117   : > { %v791_v39 = vrot.slane %v756_v54, 2 }
 0x118   : > { %v846_v58 = vadd.f32 %v1492_v6, %v823_v28  ;;  %v1283_v22 = vpop.f32.mrf.mxu0  ;;  %v1255_v59 = vpop.f32.mrf.mxu1  ;;  %v863_v11 = vmax.f32 %v847_v45, 0.0 }
 0x119   : > { %v798_v24 = vsel %vm795_vm3, %v790_v36, %v791_v39  ;;  %v794_v62 = vrot.slane %v1283_v22, 2 }
 0x11a   : > { %v862_v63 = vmax.f32 %v846_v58, 0.0  ;;  %v825_v42 = vadd.f32 %v798_v24, %v609_v57  ;;  %v759_v1 = vpop.f32.mrf.mxu0  ;;  %v615_v4 = vpop.f32.mrf.mxu1 }
 0x11b   : > { %v796_v2 = vsel %vm795_vm3, %v793_v38, %v794_v62  ;;  %v792_v5 = vrot.slane %v759_v1, 2  ;;  %v616_v37 = vadd.f32 %v615_v4, %v478_v3 }
 0x11c   : > { %v1139_v7 = vpack.c.bf16 %v862_v63, %v861_v61  ;;  %v848_v32 = vadd.f32 %v1492_v6, %v825_v42  ;;  %v827_v9 = vadd.f32 %v796_v2, %v621_v0 }
 0x11d   : > { %v797_v10 = vsel %vm795_vm3, %v792_v5, %v793_v38 }
 0x11e   : > { %1155 = vst [vmem:[%s1510_s9 + $0x28] sm:$0xff] %v1139_v7   ;;  %v864_v12 = vmax.f32 %v848_v32, 0.0  ;;  %v850_v26 = vadd.f32 %v1492_v6, %v827_v9  ;;  %v826_v44 = vadd.f32 %v797_v10, %v616_v37 }
 0x120   : > { %v1144_v13 = vpack.c.bf16 %v864_v12, %v863_v11  ;;  %v849_v8 = vadd.f32 %v1492_v6, %v826_v44  ;;  %v866_v14 = vmax.f32 %v850_v26, 0.0 }
 0x122   : > { %1156 = vst [vmem:[%s1510_s9 + $0x30] sm:$0xff] %v1144_v13   ;;  %v865_v15 = vmax.f32 %v849_v8, 0.0 }
 0x124   : > { %v1149_v34 = vpack.c.bf16 %v866_v14, %v865_v15 }
 0x126   : > { %1157 = vst [vmem:[%s1510_s9 + $0x38] sm:$0xff] %v1149_v34  }
 0x127 PF: > { %s13_s12 = sadd.s32 1, %s1325_s12  }
 0x128   : > { %p10_p4 = scmp.ge.s32.totalorder %s13_s12, 6  }
 0x12a   :  { %12 = sbr.rel (!%p10_p4) target bundleno = 1 (0x1), region = 64 }

</bundles_post_ra>
